<compile_context>
chip_gen: v5e
topology: v5e:2x2
jax: 0.10.0
libtpu: 0.0.40
codegen_flags: <defaults>
</compile_context>

<pallas_src>
import functools

import jax
import jax.numpy as jnp
from jax.experimental import pallas as pl
from jax.experimental.pallas import tpu as pltpu


VMEM_SPEC = pl.BlockSpec(memory_space=pltpu.MemorySpace.VMEM)
SMEM_SPEC = pl.BlockSpec(memory_space=pltpu.MemorySpace.SMEM)


def _dot(a, b):
    return jnp.dot(a, b, preferred_element_type=jnp.float32)


def _vmem_limit_bytes(*arrays, headroom=4 << 20, floor=16 << 20, cap=64 << 20):
    nbytes = sum(int(a.size) * jnp.dtype(a.dtype).itemsize for a in arrays)
    return int(min(max(2 * nbytes + headroom, floor), cap))


# ---------------------------------------------------------------------------
# One-time operator build:  M = U @ diag((shift + S)^exponent) @ Vh   (real)
# ---------------------------------------------------------------------------
def _build_operator_kernel(p_ref, u_ref, s_ref, vh_ref, m_ref):
    shift = p_ref[0]
    exponent = p_ref[1]
    z = shift + s_ref[...]                                   # (N, 1)
    # Real, non-negative branch of the fractional power (default config:
    # shift = 0, S = singular values >= 0).  Guarded so z == 0 never hits
    # log(0); 0^a = 0 for a > 0, 0^0 = 1.
    # TODO(synk): complex spectral_shift / negative shifted spectrum would need
    #             a full complex power (atan2 branch); not implemented here.
    pos = z > 0.0
    new_s = jnp.where(
        pos,
        jnp.exp(exponent * jnp.log(jnp.where(pos, z, 1.0))),
        jnp.where(exponent == 0.0, 1.0, 0.0),
    )
    m_ref[...] = _dot(u_ref[...], new_s * vh_ref[...])


def build_fractional_operator(U, s_col, Vh, spectral_shift, exponent):
    n = U.shape[0]
    p = jnp.array([spectral_shift, exponent], dtype=jnp.float32)
    return pl.pallas_call(
        _build_operator_kernel,
        out_shape=jax.ShapeDtypeStruct((n, n), jnp.float32),
        in_specs=[SMEM_SPEC, VMEM_SPEC, VMEM_SPEC, VMEM_SPEC],
        out_specs=VMEM_SPEC,
        compiler_params=pltpu.CompilerParams(
            vmem_limit_bytes=_vmem_limit_bytes(U, s_col, Vh)),
    )(p, U, s_col, Vh)


# ---------------------------------------------------------------------------
# Fully fused forward:  encoder -> (Euler step + energy) x L -> decoder -> abs
# ---------------------------------------------------------------------------
def _flode_fused_kernel(coef_ref,
                        x0_ref, m_ref, snl_ref,
                        enc_wr_ref, enc_wi_ref, enc_br_ref, enc_bi_ref,
                        wdr_ref, wdi_ref,
                        dec0_wr_ref, dec0_wi_ref, dec0_br_ref, dec0_bi_ref,
                        dec1_wr_ref, dec1_wi_ref, dec1_br_ref, dec1_bi_ref,
                        out_ref, er_ref, ei_ref,
                        *, num_layers):
    coef_r = coef_ref[0]          # real(iu * step_size)
    coef_i = coef_ref[1]          # imag(iu * step_size)

    m = m_ref[...]                # (N, N) real fractional-Laplacian operator
    snl = snl_ref[...]            # (N, N) real normalized Laplacian

    # --- encoder: complex Linear applied to a REAL input (imag(x0) == 0) ----
    x0 = x0_ref[...]
    xr = _dot(x0, enc_wr_ref[...]) + enc_br_ref[...]
    xi = _dot(x0, enc_wi_ref[...]) + enc_bi_ref[...]

    # --- Dirichlet energy: 0.5 * trace(x_n^H snl x_n),  x_n = x / ||x||_F ---
    # normalization folded into the final scalar: 0.5 * sum(conj(x)*snl@x)/||x||^2
    def write_energy(layer, xr, xi):
        tr = _dot(snl, xr)
        ti = _dot(snl, xi)
        nrm2 = jnp.sum(xr * xr + xi * xi, keepdims=True)            # (1, 1)
        inv = 0.5 / jnp.where(nrm2 > 0.0, nrm2, 1.0)                # guard x == 0
        er_ref[layer:layer + 1, :] = inv * jnp.sum(xr * tr + xi * ti, keepdims=True)
        ei_ref[layer:layer + 1, :] = inv * jnp.sum(xr * ti - xi * tr, keepdims=True)

    write_energy(0, xr, xi)

    wdr = wdr_ref[...]            # (1, C) diag(W) real
    wdi = wdi_ref[...]            # (1, C) diag(W) imag

    # --- forward Euler steps:  x <- x + coef * (M @ x) @ diag(W) -------------
    for layer in range(num_layers):
        tr = _dot(m, xr)
        ti = _dot(m, xi)
        # channel mixing 'd': per-column complex scale by diag(W)
        zr = tr * wdr - ti * wdi
        zi = tr * wdi + ti * wdr
        xr = xr + coef_r * zr - coef_i * zi
        xi = xi + coef_r * zi + coef_i * zr
        write_energy(layer + 1, xr, xi)

    # --- decoder: Linear -> complex LeakyReLU -> Linear -> abs ---------------
    hr = _dot(xr, dec0_wr_ref[...]) - _dot(xi, dec0_wi_ref[...]) + dec0_br_ref[...]
    hi = _dot(xr, dec0_wi_ref[...]) + _dot(xi, dec0_wr_ref[...]) + dec0_bi_ref[...]
    hr = jnp.where(hr >= 0.0, hr, 0.01 * hr)
    hi = jnp.where(hi >= 0.0, hi, 0.01 * hi)
    yr = _dot(hr, dec1_wr_ref[...]) - _dot(hi, dec1_wi_ref[...]) + dec1_br_ref[...]
    yi = _dot(hr, dec1_wi_ref[...]) + _dot(hi, dec1_wr_ref[...]) + dec1_bi_ref[...]
    out_ref[...] = jnp.sqrt(yr * yr + yi * yi)


def flode_forward(params, x, U, S, Vh, snl, num_layers,
                  eq="-s", spectral_shift=0.0, exponent=1.0, step_size=1.0):
    n = x.shape[0]
    x = x.astype(jnp.float32)
    U = U.astype(jnp.float32)
    Vh = Vh.astype(jnp.float32)
    snl = snl.astype(jnp.float32)
    s_col = S.astype(jnp.float32).reshape(n, 1)

    # Hoisted, layer-invariant operator (built once, stays resident in VMEM).
    M = build_fractional_operator(U, s_col, Vh, spectral_shift, exponent)

    iu = {"h": 1.0 + 0.0j, "-h": -1.0 + 0.0j, "s": 1.0j, "-s": -1.0j}[eq]
    coef = iu * complex(step_size)
    coef_arr = jnp.array([coef.real, coef.imag], dtype=jnp.float32)

    out_ch = params["dec1_wr"].shape[1]
    vmem_arrays = (x, M, snl,
                   params["enc_wr"], params["enc_wi"], params["enc_br"], params["enc_bi"],
                   params["wdr"], params["wdi"],
                   params["dec0_wr"], params["dec0_wi"], params["dec0_br"], params["dec0_bi"],
                   params["dec1_wr"], params["dec1_wi"], params["dec1_br"], params["dec1_bi"])

    out, er, ei = pl.pallas_call(
        functools.partial(_flode_fused_kernel, num_layers=int(num_layers)),
        out_shape=(jax.ShapeDtypeStruct((n, out_ch), jnp.float32),
                   jax.ShapeDtypeStruct((num_layers + 1, 1), jnp.float32),
                   jax.ShapeDtypeStruct((num_layers + 1, 1), jnp.float32)),
        in_specs=[SMEM_SPEC] + [VMEM_SPEC] * 17,
        out_specs=(VMEM_SPEC, VMEM_SPEC, VMEM_SPEC),
        compiler_params=pltpu.CompilerParams(
            vmem_limit_bytes=_vmem_limit_bytes(*vmem_arrays)),
    )(coef_arr, *vmem_arrays)

    energy = er[:, 0] + 1j * ei[:, 0]
    return out, energy


def init_params(key, in_channels, hidden_channels, out_channels):
    ks = jax.random.split(key, 14)

    def uni(k, shape, fan_in):
        bound = 1.0 / jnp.sqrt(jnp.float32(fan_in))
        return jax.random.uniform(k, shape, jnp.float32, -bound, bound)

    # channel-mixing matrix W ~ normal (real & imag); 'd' mixing uses its diagonal
    w_r = jax.random.normal(ks[0], (hidden_channels, hidden_channels), jnp.float32)
    w_i = jax.random.normal(ks[1], (hidden_channels, hidden_channels), jnp.float32)

    params = {
        # encoder Linear(in -> hidden), weight stored transposed (in, hidden)
        "enc_wr": uni(ks[2], (in_channels, hidden_channels), in_channels),
        "enc_wi": uni(ks[3], (in_channels, hidden_channels), in_channels),
        "enc_br": uni(ks[4], (1, hidden_channels), in_channels),
        "enc_bi": uni(ks[5], (1, hidden_channels), in_channels),
        # diag(W) as (1, hidden) row vectors
        "wdr": jnp.diag(w_r).reshape(1, hidden_channels),
        "wdi": jnp.diag(w_i).reshape(1, hidden_channels),
        # decoder layer 0: Linear(hidden -> hidden)
        "dec0_wr": uni(ks[6], (hidden_channels, hidden_channels), hidden_channels),
        "dec0_wi": uni(ks[7], (hidden_channels, hidden_channels), hidden_channels),
        "dec0_br": uni(ks[8], (1, hidden_channels), hidden_channels),
        "dec0_bi": uni(ks[9], (1, hidden_channels), hidden_channels),
        # decoder layer 1: Linear(hidden -> out)
        "dec1_wr": uni(ks[10], (hidden_channels, out_channels), hidden_channels),
        "dec1_wi": uni(ks[11], (hidden_channels, out_channels), hidden_channels),
        "dec1_br": uni(ks[12], (1, out_channels), hidden_channels),
        "dec1_bi": uni(ks[13], (1, out_channels), hidden_channels),
    }
    return params


if __name__ == "__main__":
    N = 64            # number of graph nodes
    IN_CH = 16
    HIDDEN = 32
    OUT_CH = 8
    NUM_LAYERS = 4

    key = jax.random.PRNGKey(0)
    k_data, k_lap, k_param = jax.random.split(key, 3)

    # node features (real -> complex with zero imaginary part)
    x = jax.random.normal(k_data, (N, IN_CH), jnp.float32)

    # synthetic symmetric "normalized Laplacian" and its SVD (glue, not kernel)
    a = jax.random.normal(k_lap, (N, N), jnp.float32)
    snl = 0.5 * (a + a.T)
    U, S, Vh = jnp.linalg.svd(snl)

    params = init_params(k_param, IN_CH, HIDDEN, OUT_CH)

    out, energy = flode_forward(params, x, U, S, Vh, snl, NUM_LAYERS)
    out = jax.block_until_ready(out)
    energy = jax.block_until_ready(energy)

    assert out.shape == (N, OUT_CH) and out.dtype == jnp.float32
    assert energy.shape == (NUM_LAYERS + 1,) and jnp.iscomplexobj(energy)
    assert bool(jnp.all(jnp.isfinite(out)))
    assert bool(jnp.all(jnp.isfinite(energy.real))) and bool(jnp.all(jnp.isfinite(energy.imag)))
    print("KERNEL_OK")
</pallas_src>

<mosaic_0001>
module attributes {stable_mosaic.version = 11 : i64} {
  func.func @_build_operator_kernel(%arg0: memref<2xf32, #tpu.memory_space<smem>>, %arg1: memref<64x64xf32, #tpu.memory_space<vmem>>, %arg2: memref<64x1xf32, #tpu.memory_space<vmem>>, %arg3: memref<64x64xf32, #tpu.memory_space<vmem>>, %arg4: memref<64x64xf32, #tpu.memory_space<vmem>>) attributes {dimension_semantics = [], scalar_prefetch = 0 : i64, scratch_operands = 0 : i64, tpu.core_type = #tpu.core_type<tc>} {
    %c0 = arith.constant 0 : index
    %0 = memref.load %arg0[%c0] : memref<2xf32, #tpu.memory_space<smem>>
    %c1 = arith.constant 1 : index
    %1 = memref.load %arg0[%c1] : memref<2xf32, #tpu.memory_space<smem>>
    %c0_0 = arith.constant 0 : index
    %c0_1 = arith.constant 0 : index
    %2 = vector.load %arg2[%c0_0, %c0_1] : memref<64x1xf32, #tpu.memory_space<vmem>>, vector<64x1xf32>
    %3 = vector.broadcast %0 : f32 to vector<64x1xf32>
    %4 = arith.addf %3, %2 : vector<64x1xf32>
    %cst = arith.constant 0.000000e+00 : f32
    %5 = vector.broadcast %cst : f32 to vector<64x1xf32>
    %6 = arith.cmpf ogt, %4, %5 : vector<64x1xf32>
    %cst_2 = arith.constant 1.000000e+00 : f32
    %7 = vector.broadcast %cst_2 : f32 to vector<64x1xf32>
    %8 = arith.select %6, %4, %7 : vector<64x1xi1>, vector<64x1xf32>
    %9 = math.log %8 : vector<64x1xf32>
    %10 = vector.broadcast %1 : f32 to vector<64x1xf32>
    %11 = arith.mulf %10, %9 : vector<64x1xf32>
    %12 = math.exp %11 : vector<64x1xf32>
    %cst_3 = arith.constant 0.000000e+00 : f32
    %13 = arith.cmpf oeq, %1, %cst_3 : f32
    %cst_4 = arith.constant 1.000000e+00 : f32
    %cst_5 = arith.constant 0.000000e+00 : f32
    %14 = arith.select %13, %cst_4, %cst_5 : f32
    %15 = vector.broadcast %14 : f32 to vector<64x1xf32>
    %16 = arith.select %6, %12, %15 : vector<64x1xi1>, vector<64x1xf32>
    %c0_6 = arith.constant 0 : index
    %c0_7 = arith.constant 0 : index
    %17 = vector.load %arg1[%c0_6, %c0_7] : memref<64x64xf32, #tpu.memory_space<vmem>>, vector<64x64xf32>
    %c0_8 = arith.constant 0 : index
    %c0_9 = arith.constant 0 : index
    %18 = vector.load %arg3[%c0_8, %c0_9] : memref<64x64xf32, #tpu.memory_space<vmem>>, vector<64x64xf32>
    %19 = vector.broadcast %16 : vector<64x1xf32> to vector<64x64xf32>
    %20 = arith.mulf %19, %18 : vector<64x64xf32>
    %cst_10 = arith.constant dense<0.000000e+00> : vector<64x64xf32>
    %21 = tpu.matmul %17, %20, %cst_10 {dimension_numbers = #tpu.dot_dimension_numbers<[1], [0], [0], [1], [0, 0, 1, 1], [], []>} : vector<64x64xf32>, vector<64x64xf32>, vector<64x64xf32> -> vector<64x64xf32>
    %c0_11 = arith.constant 0 : index
    %c0_12 = arith.constant 0 : index
    %22 = vector.load %arg4[%c0_11, %c0_12] : memref<64x64xf32, #tpu.memory_space<vmem>>, vector<64x64xf32>
    tpu.vector_store %arg4[%c0_11, %c0_12], %21 {strides = array<i32>} : memref<64x64xf32, #tpu.memory_space<vmem>>, vector<64x64xf32>,
    return
  }
}

</mosaic_0001>

<bundles_post_ra>
// kernel: tpu_custom_call.1
= control target key start
LH: loop header
LB: loop body
LE: loop exit
PB: predicated region body
PF: predicated region fallthrough
CT: control target
= control target key end

     0   :  { %9 = vsyncpa [#allocation5], 0  ;;  %s610_s0 = inlined_call_operand.vmem [shape: f32[2], index: 0, kind: input, shape index: {}]   ;;  %s611_s1 = inlined_call_operand.vmem [shape: f32[64,64], index: 1, kind: input, shape index: {}]   ;;  %s612_s2 = inlined_call_operand.vmem [shape: f32[64,1], index: 2, kind: input, shape index: {}]   ;;  %s613_s3 = inlined_call_operand.hbm [shape: f32[64,64], index: 3, kind: input, shape index: {}]   ;;  %s614_s4 = inlined_call_operand.hbm [shape: f32[64,64], index: 4, kind: output, shape index: {}]  }
   0x1   :  { %10 = vsyncpa [#allocation3], 0 }
   0x2   :  { %11 = vsyncpa [#allocation4], 0  ;;  %s17_s17 = sshll.u32 %s610_s0, 4  ;;  %s29_s20 = sshll.u32 %s613_s3, 4  ;;  %s18_s17 = int_to_ptr.vmem [resolvable:$true] %s17_s17  ;;  %s30_s20 = int_to_ptr.hbm [resolvable:$true] %s29_s20 }
   0x3   :  { %s432_s21 = smov [#allocation2]   ;;  %s433_s22 = smov [#allocation6]  }
   0x4   :  { %20 = dma.vmem_to_smem %s18_s17, 16, %s432_s21, [#allocation5]  }
   0x5   :  { %s31_s23 = sshll.u32 %s433_s22, 4  ;;  %s434_s24 = smov 128   ;;  %s32_s23 = int_to_ptr.vmem [resolvable:$true] %s31_s23 }
   0x6   :  { %s435_s25 = smov 8  }
   0x7   :  { %37 = dma.hbm_to_vmem [thread:$0]  %s30_s20, 1024, %s32_s23, [#allocation3], %s434_s24, %s434_s24, %s435_s25  }
   0x8   :  { %426 = dma.done.wait [#allocation5], 16  }
   0x9   :  { %427 = vsyncadd [#allocation5], 4294967280 }
   0xa   :  { %428 = dma.done.wait [#allocation3], 1024  }
   0xb   :  { %429 = vsyncadd [#allocation3], 4294966272 }
   0xc   :  { %46 = sfence }
   0xd   :  { %s47_s0 = sld [smem:[#allocation2]]  ;;  %v436_v0 = vmov 0   ;;  %v56_v1 = vld [vmem:[%s612_s2 + $0x38] sm:$0xff]  ;;  %v54_v2 = vld [vmem:[%s612_s2 + $0x28] sm:$0xff]  ;;  %v55_v3 = vld [vmem:[%s612_s2 + $0x30] sm:$0xff]  ;;  %vm198_vm8 = vcmask 523264  }
   0xe   :  { %332 = vset.pattern.permute.xlu1 %v436_v0  ;;  %331 = vset.pattern.permute.xlu0 %v436_v0  ;;  %v53_v4 = vld [vmem:[%s612_s2 + $0x20] sm:$0xff]  ;;  %v50_v5 = vld [vmem:[%s612_s2 + $0x8] sm:$0xff]  ;;  %v52_v7 = vld [vmem:[%s612_s2 + $0x18] sm:$0xff]  ;;  %s510_s15 = sld [smem:[#allocation2 + $0x1]]  ;;  %s278_s9 = sshll.u32 %s614_s4, 4  ;;  %s279_s9 = int_to_ptr.hbm [resolvable:$true] %s278_s9 }
   0xf   :  { %333 = vset.pattern.permute.xlu2 %v436_v0  ;;  %v49_v6 = vld [vmem:[%s612_s2] sm:$0xff]  ;;  %v51_v12 = vld [vmem:[%s612_s2 + $0x10] sm:$0xff] }
  0x13   :  { %v57_v8 = vstv %s47_s0 }
  0x14   :  { %v493_v9 = vadd.f32 %v57_v8, %v56_v1  ;;  %v495_v10 = vadd.f32 %v57_v8, %v54_v2  ;;  %v497_v11 = vadd.f32 %v57_v8, %v55_v3  ;;  %v502_v13 = vadd.f32 %v57_v8, %v53_v4  ;;  %p123_p0 = scmp.eq.f32.partialorder %s510_s15, 0.0 }
  0x15   :  { %v504_v14 = vadd.f32 %v57_v8, %v50_v5  ;;  %v506_v15 = vadd.f32 %v57_v8, %v49_v6  ;;  %v508_v16 = vadd.f32 %v57_v8, %v52_v7  ;;  %v515_v17 = vadd.f32 %v57_v8, %v51_v12  ;;  %v149_v12 = vld [vmem:[#allocation6 + $0x38] sm:$0xff] }
  0x16   :  { %vm73_vm0 = vcmp.gt.f32.partialorder %v493_v9, 0.0  ;;  %vm71_vm1 = vcmp.gt.f32.partialorder %v495_v10, 0.0  ;;  %vm72_vm2 = vcmp.gt.f32.partialorder %v497_v11, 0.0  ;;  %vm70_vm3 = vcmp.gt.f32.partialorder %v502_v13, 0.0  ;;  %s124_s2 = scalar_select %p123_p0, 1.0, 0.0 }
  0x17   :  { %v81_v18 = vsel %vm73_vm0, %v493_v9, 1.0  ;;  %v79_v19 = vsel %vm71_vm1, %v495_v10, 1.0  ;;  %v80_v20 = vsel %vm72_vm2, %v497_v11, 1.0  ;;  %v78_v21 = vsel %vm70_vm3, %v502_v13, 1.0 }
  0x18   :  { %334 = vlog2.f32 %v81_v18  ;;  %vm67_vm4 = vcmp.gt.f32.partialorder %v504_v14, 0.0  ;;  %vm66_vm5 = vcmp.gt.f32.partialorder %v506_v15, 0.0  ;;  %vm69_vm6 = vcmp.gt.f32.partialorder %v508_v16, 0.0 }
  0x19   :  { %336 = vlog2.f32 %v79_v19  ;;  %v75_v22 = vsel %vm67_vm4, %v504_v14, 1.0  ;;  %v74_v23 = vsel %vm66_vm5, %v506_v15, 1.0  ;;  %vm68_vm7 = vcmp.gt.f32.partialorder %v515_v17, 0.0 }
  0x1a   :  { %338 = vlog2.f32 %v80_v20  ;;  %v77_v24 = vsel %vm69_vm6, %v508_v16, 1.0  ;;  %v76_v25 = vsel %vm68_vm7, %v515_v17, 1.0  ;;  %v98_v27 = vstv %s510_s15  ;;  %v148_v17 = vld [vmem:[#allocation6 + $0x30] sm:$0xff]  ;;  %v147_v20 = vld [vmem:[#allocation6 + $0x28] sm:$0xff] }
  0x1b   :  { %340 = vlog2.f32 %v78_v21  ;;  %v125_v53 = vstv %s124_s2 }
  0x1c   :  { %342 = vlog2.f32 %v75_v22 }
  0x1d   :  { %344 = vlog2.f32 %v74_v23  ;;  %v146_v23 = vld [vmem:[#allocation6 + $0x20] sm:$0xff] }
  0x1e   :  { %v335_v26 = vpop.eup %334  ;;  %346 = vlog2.f32 %v77_v24  ;;  %v145_v24 = vld [vmem:[#allocation6 + $0x18] sm:$0xff] }
  0x1f   :  { %v337_v28 = vpop.eup %336  ;;  %v97_v29 = vmul.f32 0.6931472, %v335_v26  ;;  %348 = vlog2.f32 %v76_v25  ;;  %v144_v26 = vld [vmem:[#allocation6 + $0x10] sm:$0xff] }
  0x20   :  { %v339_v30 = vpop.eup %338  ;;  %v93_v31 = vmul.f32 0.6931472, %v337_v28 }
  0x21   :  { %v341_v32 = vpop.eup %340  ;;  %v106_v33 = vmul.f32 %v98_v27, %v97_v29  ;;  %v95_v34 = vmul.f32 0.6931472, %v339_v30  ;;  %v143_v29 = vld [vmem:[#allocation6 + $0x8] sm:$0xff] }
  0x22   :  { %v343_v35 = vpop.eup %342  ;;  %v104_v36 = vmul.f32 %v98_v27, %v93_v31  ;;  %v91_v37 = vmul.f32 0.6931472, %v341_v32  ;;  %v142_v32 = vld [vmem:[#allocation6] sm:$0xff] }
  0x23   :  { %v345_v38 = vpop.eup %344  ;;  %v121_v39 = vmul.f32 1.442695, %v106_v33  ;;  %v105_v40 = vmul.f32 %v98_v27, %v95_v34  ;;  %v85_v46 = vmul.f32 0.6931472, %v343_v35 }
  0x24   :  { %v347_v41 = vpop.eup %346  ;;  %v117_v42 = vmul.f32 1.442695, %v104_v36  ;;  %v103_v43 = vmul.f32 %v98_v27, %v91_v37  ;;  %v83_v49 = vmul.f32 0.6931472, %v345_v38  ;;  %v138_v36 = vld [vmem:[%s611_s1 + $0x20] sm:$0xff]  ;;  %v140_v37 = vld [vmem:[%s611_s1 + $0x30] sm:$0xff] }
  0x25   :  { %v349_v44 = vpop.eup %348  ;;  %350 = vpow2.f32 %v121_v39  ;;  %v119_v45 = vmul.f32 1.442695, %v105_v40  ;;  %v89_v47 = vmul.f32 0.6931472, %v347_v41  ;;  %v100_v54 = vmul.f32 %v98_v27, %v85_v46  ;;  %v134_v38 = vld [vmem:[%s611_s1] sm:$0xff]  ;;  %v136_v39 = vld [vmem:[%s611_s1 + $0x10] sm:$0xff] }
  0x26   :  { %352 = vpow2.f32 %v117_v42  ;;  %v115_v48 = vmul.f32 1.442695, %v103_v43  ;;  %v87_v50 = vmul.f32 0.6931472, %v349_v44  ;;  %v99_v56 = vmul.f32 %v98_v27, %v83_v49  ;;  %v139_v40 = vld [vmem:[%s611_s1 + $0x28] sm:$0xff]  ;;  %v141_v41 = vld [vmem:[%s611_s1 + $0x38] sm:$0xff] }
  0x27   :  { %v102_v51 = vmul.f32 %v98_v27, %v89_v47  ;;  %354 = vpow2.f32 %v119_v45  ;;  %v109_v62 = vmul.f32 1.442695, %v100_v54  ;;  %v135_v42 = vld [vmem:[%s611_s1 + $0x8] sm:$0xff]  ;;  %v137_v43 = vld [vmem:[%s611_s1 + $0x18] sm:$0xff]  ;;  %s437_s1 = smov [#allocation7]  }
  0x28   :  { %v101_v52 = vmul.f32 %v98_v27, %v87_v50  ;;  %356 = vpow2.f32 %v115_v48  ;;  %v107_v63 = vmul.f32 1.442695, %v99_v56  ;;  %s276_s6 = sshll.u32 %s437_s1, 4  ;;  %s277_s6 = int_to_ptr.vmem [resolvable:$true] %s276_s6 }
  0x29   :  { %v113_v55 = vmul.f32 1.442695, %v102_v51 }
  0x2a   :  { %v111_v58 = vmul.f32 1.442695, %v101_v52 }
  0x2b   :  { %v351_v57 = vpop.eup %350  ;;  %358 = vpow2.f32 %v113_v55 }
  0x2c   :  { %v353_v59 = vpop.eup %352  ;;  %v133_v60 = vsel %vm73_vm0, %v351_v57, %v125_v53  ;;  %360 = vpow2.f32 %v111_v58 }
  0x2d   :  { %187 = vperm.xlu0 %331, %v133_v60   ;;  %v131_v61 = vsel %vm71_vm1, %v353_v59, %v125_v53  ;;  %v355_v0 = vpop.eup %354  ;;  %362 = vpow2.f32 %v109_v62 }
  0x2e   :  { %177 = vperm.xlu1 %332, %v131_v61   ;;  %v357_v1 = vpop.eup %356  ;;  %v132_v3 = vsel %vm72_vm2, %v355_v0, %v125_v53  ;;  %364 = vpow2.f32 %v107_v63 }
  0x2f   :  { %v130_v5 = vsel %vm70_vm3, %v357_v1, %v125_v53 }
  0x31   :  { %v359_v2 = vpop.eup %358 }
  0x32   :  { %v129_v4 = vsel %vm69_vm6, %v359_v2, %v125_v53  ;;  %v361_v6 = vpop.eup %360 }
  0x33   :  { %167 = vperm.xlu2 %333, %v129_v4   ;;  %v363_v7 = vpop.eup %362  ;;  %v128_v9 = vsel %vm68_vm7, %v361_v6, %v125_v53 }
  0x34   :  { %v365_v8 = vpop.eup %364  ;;  %v127_v10 = vsel %vm67_vm4, %v363_v7, %v125_v53 }
  0x35   :  { %182 = vperm.xlu0 %331, %v132_v3   ;;  %v126_v11 = vsel %vm66_vm5, %v365_v8, %v125_v53 }
  0x36   :  { %172 = vperm.xlu1 %332, %v130_v5  }
  0x3b   :  { %162 = vperm.xlu2 %333, %v128_v9  }
  0x3d   :  { %157 = vperm.xlu0 %331, %v127_v10  }
  0x3e   :  { %152 = vperm.xlu1 %332, %v126_v11  }
  0x8d   :  { %v168_v19 = vpop.permute.xlu2 %167 }
  0x8e   :  { %v193_v28 = vmul.f32 %v168_v19, %v145_v24 }
  0x95   :  { %v163_v27 = vpop.permute.xlu2 %162 }
  0x96   :  { %v192_v31 = vmul.f32 %v163_v27, %v144_v26 }
  0x9f   :  { %v188_v13 = vpop.permute.xlu0 %187 }
  0xa0   :  { %v197_v16 = vmul.f32 %v188_v13, %v149_v12  ;;  %v178_v18 = vpop.permute.xlu1 %177 }
  0xa1   :  { %v195_v15 = vmul.f32 %v178_v18, %v147_v20 }
  0xa2   :  { %231 = vmatpush.msra.mxu0 %v197_v16  ;;  %301 = vmatpush.msra.mxu1 %v197_v16 }
  0xa3   :  { %302 = vmatpush.msra.mxu2 %v197_v16  ;;  %303 = vmatpush.msra.mxu3 %v197_v16 }
  0xa7   :  { %v183_v21 = vpop.permute.xlu0 %182 }
  0xa8   :  { %v196_v14 = vmul.f32 %v183_v21, %v148_v17  ;;  %v173_v22 = vpop.permute.xlu1 %172 }
  0xa9   :  { %v194_v25 = vmul.f32 %v173_v22, %v146_v23 }
  0xaa   :  { %232 = vmatpush.msra.mxu0 %v196_v14  ;;  %304 = vmatpush.msra.mxu1 %v196_v14 }
  0xab   :  { %305 = vmatpush.msra.mxu2 %v196_v14  ;;  %306 = vmatpush.msra.mxu3 %v196_v14 }
  0xac   :  { %233 = vmatpush.msra.mxu0 %v195_v15  ;;  %307 = vmatpush.msra.mxu1 %v195_v15 }
  0xad   :  { %308 = vmatpush.msra.mxu2 %v195_v15  ;;  %309 = vmatpush.msra.mxu3 %v195_v15 }
  0xae   :  { %234 = vmatpush.msra.mxu0 %v194_v25  ;;  %310 = vmatpush.msra.mxu1 %v194_v25 }
  0xaf   :  { %311 = vmatpush.msra.mxu2 %v194_v25  ;;  %312 = vmatpush.msra.mxu3 %v194_v25  ;;  %v158_v30 = vpop.permute.xlu0 %157 }
  0xb0   :  { %235 = vmatpush.msra.mxu0 %v193_v28  ;;  %313 = vmatpush.msra.mxu1 %v193_v28  ;;  %v153_v33 = vpop.permute.xlu1 %152  ;;  %v191_v34 = vmul.f32 %v158_v30, %v143_v29 }
  0xb1   :  { %314 = vmatpush.msra.mxu2 %v193_v28  ;;  %315 = vmatpush.msra.mxu3 %v193_v28  ;;  %v190_v35 = vmul.f32 %v153_v33, %v142_v32 }
  0xb2   :  { %236 = vmatpush.msra.mxu0 %v192_v31  ;;  %316 = vmatpush.msra.mxu1 %v192_v31 }
  0xb3   :  { %317 = vmatpush.msra.mxu2 %v192_v31  ;;  %318 = vmatpush.msra.mxu3 %v192_v31 }
  0xb4   :  { %237 = vmatpush.msra.mxu0 %v191_v34  ;;  %319 = vmatpush.msra.mxu1 %v191_v34 }
  0xb5   :  { %320 = vmatpush.msra.mxu2 %v191_v34  ;;  %321 = vmatpush.msra.mxu3 %v191_v34 }
  0xb6   :  { %238 = vmatpush.msra.mxu0 %v190_v35  ;;  %322 = vmatpush.msra.mxu1 %v190_v35 }
  0xb7   :  { %323 = vmatpush.msra.mxu2 %v190_v35  ;;  %324 = vmatpush.msra.mxu3 %v190_v35 }
  0xb8   :  { %297 = vmatmul.msk.f32.vlgmr.msra.gmra.mxu2 %vm198_vm8, %v138_v36  ;;  %299 = vmatmul.msk.f32.vlgmr.msra.gmra.mxu3 %vm198_vm8, %v140_v37 }
  0xb9   :  { %293 = vmatmul.msk.f32.vlgmr.msra.gmra.mxu0 %vm198_vm8, %v134_v38  ;;  %295 = vmatmul.msk.f32.vlgmr.msra.gmra.mxu1 %vm198_vm8, %v136_v39 }
  0xc0   :  { %298 = vmatmul.msk.f32.gmra.mxu2 %vm198_vm8, %v139_v40  ;;  %300 = vmatmul.msk.f32.gmra.mxu3 %vm198_vm8, %v141_v41 }
  0xc1   :  { %294 = vmatmul.msk.f32.gmra.mxu0 %vm198_vm8, %v135_v42  ;;  %296 = vmatmul.msk.f32.gmra.mxu1 %vm198_vm8, %v137_v43 }
 0x136   :  { %v240_v44 = vpop.f32.mrf.mxu0  ;;  %v246_v45 = vpop.f32.mrf.mxu1 }
 0x137   :  { %264 = vst.msk [vmem:[#allocation7] sm:$0xff] %vm198_vm8, %v240_v44 }
 0x138   :  { %266 = vst.msk [vmem:[#allocation7 + $0x10] sm:$0xff] %vm198_vm8, %v246_v45 }
 0x13b   :  { %v252_v46 = vpop.f32.mrf.mxu2  ;;  %v258_v47 = vpop.f32.mrf.mxu3 }
 0x13c   :  { %268 = vst.msk [vmem:[#allocation7 + $0x20] sm:$0xff] %vm198_vm8, %v252_v46 }
 0x13d   :  { %270 = vst.msk [vmem:[#allocation7 + $0x30] sm:$0xff] %vm198_vm8, %v258_v47 }
 0x13e   :  { %v243_v48 = vpop.f32.mrf.mxu0  ;;  %v249_v49 = vpop.f32.mrf.mxu1 }
 0x13f   :  { %265 = vst.msk [vmem:[#allocation7 + $0x8] sm:$0xff] %vm198_vm8, %v243_v48 }
 0x140   :  { %267 = vst.msk [vmem:[#allocation7 + $0x18] sm:$0xff] %vm198_vm8, %v249_v49 }
 0x143   :  { %v255_v50 = vpop.f32.mrf.mxu2  ;;  %v261_v51 = vpop.f32.mrf.mxu3 }
 0x144   :  { %269 = vst.msk [vmem:[#allocation7 + $0x28] sm:$0xff] %vm198_vm8, %v255_v50 }
 0x145   :  { %271 = vst.msk [vmem:[#allocation7 + $0x38] sm:$0xff] %vm198_vm8, %v261_v51 }
 0x146   :  { %284 = dma.vmem_to_hbm [thread:$0]  %s277_s6, 1024, %s279_s9, [#allocation4], %s434_s24, %s434_s24, %s435_s25  }
 0x147   :  { %430 = dma.done.wait [#allocation4], 1024  }
 0x148   :  { %431 = vsyncadd [#allocation4], 4294966272 }
 0x149   :  { %289 = vsyncpa [#allocation3], 1 }
 0x14a   :  { %290 = vsyncpa [#allocation4], 1 }
 0x14b   :  { %291 = vsyncpa [#allocation5], 1 }

</bundles_post_ra>
